<compile_context>
chip_gen: v5e
topology: v5e:2x2
jax: 0.10.0
libtpu: 0.0.40
codegen_flags: <defaults>
</compile_context>

<pallas_src>
import functools
import math

import jax
import jax.numpy as jnp
from jax.experimental import pallas as pl
from jax.experimental.pallas import tpu as pltpu


def _round_up(x, m):
    return (x + m - 1) // m * m


def _linears_kernel(x_ref, w0_ref, b0_ref, w1_ref, b1_ref, o_ref, *, d1_real):
    """Fused Linear -> ReLU -> LayerNorm -> Linear for one batch tile.

    x_ref  : (TB, D0p)  bf16
    w0_ref : (D0p, D1p) bf16   (W0^T, zero-padded)
    b0_ref : (1, D1p)   f32    (zero-padded)
    w1_ref : (D1p, D2p) bf16   (gamma-scaled W1^T, zero-padded rows/cols)
    b1_ref : (1, D2p)   f32    (beta @ W1^T + b1, zero-padded)
    """
    # Layer 0: bf16 x bf16 -> f32 accumulate on the MXU.
    h = jnp.dot(x_ref[...], w0_ref[...], preferred_element_type=jnp.float32)
    h = h + b0_ref[...]

    # Activation (torch.relu).  Padded hidden columns stay exactly 0.
    h = jnp.maximum(h, 0.0)

    # RegLayer: LayerNorm over the *real* D1 features, eps = 1e-5.
    # Padded columns are zero, so plain sums with an explicit 1/D1 divisor are
    # exact.  Clamp the E[h^2]-mean^2 variance at 0 to guard against f32
    # cancellation before rsqrt.
    inv_d = 1.0 / d1_real
    mean = jnp.sum(h, axis=-1, keepdims=True) * inv_d
    sumsq = jnp.sum(h * h, axis=-1, keepdims=True) * inv_d
    var = jnp.maximum(sumsq - mean * mean, 0.0)
    h_norm = (h - mean) * jax.lax.rsqrt(var + 1e-5)
    # Padded columns of h_norm are nonzero (-mean * rsqrt) but the matching
    # rows of the folded W1 are zero, so they never reach the output.

    # Layer 1 (LN affine already folded into w1/b1): bf16 x bf16 -> f32.
    out = jnp.dot(h_norm.astype(jnp.bfloat16), w1_ref[...],
                  preferred_element_type=jnp.float32)
    out = out + b1_ref[...]

    o_ref[...] = out.astype(o_ref.dtype)


def _vmem_limits():
    """(vmem_limit_bytes, tile_budget_bytes) safe across v5e/v6e/v7x."""
    try:
        cap = int(pltpu.get_tpu_info().vmem_capacity_bytes)
    except Exception:
        cap = 64 << 20  # conservative fallback: v7x per-TensorCore VMEM
    limit = max(cap - (16 << 20), 32 << 20)   # leave >= 16 MiB headroom
    limit = min(limit, 100 << 20)             # never ask for > 100 MiB scoped
    budget = int(limit * 0.6)                 # tile search budget << limit
    return limit, budget


def _pick_tile_b(B, D0p, D1p, D2p, budget_bytes, cap):
    """Balanced, VMEM-budgeted, MXU-friendly batch tile (multiple of 16)."""
    bf16, f32 = 2, 4

    def footprint(tb):
        acts = 2 * tb * D0p * bf16 + 2 * tb * D2p * f32          # x/out, 2-buffered
        wts = (D0p * D1p * bf16 + D1p * D2p * bf16               # single-buffered
               + D1p * f32 + D2p * f32)
        inter = 3 * tb * D1p * f32                                # h / h^2 / h_norm
        return acts + wts + inter

    # Balanced tiles: padding bounded by ~15 rows instead of a full tile.
    n_tiles = max(1, -(-B // cap))
    tile_b = _round_up(max(1, -(-B // n_tiles)), 16)

    # Shrink until it fits the VMEM budget.
    while tile_b > 16 and footprint(tile_b) > budget_bytes:
        tile_b -= 16

    # Prefer multiples of 256 (full 256-wide MXU passes on v6e/v7x) when free.
    if tile_b >= 256:
        snapped = _round_up(tile_b, 256)
        if footprint(snapped) <= budget_bytes and snapped <= _round_up(B, 16):
            tile_b = snapped

    # Guarantee >= 2 grid steps for mid/large batches so the "parallel" axis
    # can shard across v7x's two TensorCores.
    if B > 16 and _round_up(B, tile_b) // tile_b < 2:
        tile_b = _round_up(-(-B // 2), 16)

    tile_b = max(16, min(tile_b, _round_up(B, 16)))
    return _round_up(tile_b, 16)


def linears_forward(x, w0_t, b0, gamma, beta, w1_t, b1, *, tile_b=None):
    """x: (B, D0) float32 -> (B, D2) float32."""
    B, D0 = x.shape
    D1 = w0_t.shape[1]
    D2 = w1_t.shape[1]

    # Lane-dense padded feature dims (multiples of 128).
    D0p = _round_up(D0, 128)
    D1p = _round_up(D1, 128)
    D2p = _round_up(D2, 128)

    vmem_limit, vmem_budget = _vmem_limits()
    tile_cap = 2048 if vmem_budget >= (48 << 20) else 1024

    if tile_b is None:
        tile_b = _pick_tile_b(B, D0p, D1p, D2p, vmem_budget, tile_cap)
    tile_b = _round_up(max(16, min(int(tile_b), _round_up(B, 16))), 16)
    Bp = _round_up(B, tile_b)

    # Fold the LayerNorm affine into the second linear (exact: dropout = id).
    #   W1' = diag(gamma) @ W1^T ,  b1' = beta @ W1^T + b1
    w1_fold = w1_t * gamma.reshape(-1, 1)
    b1_fold = beta.reshape(1, -1) @ w1_t + b1

    # Zero-pad parameters; padded W0^T cols / W1' rows are zero so padding is
    # inert, and b0/b1 padding is zero.
    w0_p = jnp.zeros((D0p, D1p), jnp.bfloat16).at[:D0, :D1].set(
        w0_t.astype(jnp.bfloat16))
    b0_p = jnp.zeros((1, D1p), jnp.float32).at[:, :D1].set(b0)
    w1_p = jnp.zeros((D1p, D2p), jnp.bfloat16).at[:D1, :D2].set(
        w1_fold.astype(jnp.bfloat16))
    b1_p = jnp.zeros((1, D2p), jnp.float32).at[:, :D2].set(b1_fold)

    # Stage x directly in bf16 (the kernel only ever reads bf16); skip padding
    # when shapes already align.
    if Bp == B and D0p == D0:
        x_p = x.astype(jnp.bfloat16)
    else:
        x_p = jnp.zeros((Bp, D0p), jnp.bfloat16).at[:B, :D0].set(
            x.astype(jnp.bfloat16))

    kernel = functools.partial(_linears_kernel, d1_real=D1)

    def _run(single_buffer_weights):
        wmode = ({"pipeline_mode": pl.Buffered(1)}
                 if single_buffer_weights else {})
        grid_spec = pltpu.PrefetchScalarGridSpec(
            num_scalar_prefetch=0,
            grid=(Bp // tile_b,),
            in_specs=[
                pl.BlockSpec((tile_b, D0p), lambda i: (i, 0)),        # x tile
                pl.BlockSpec((D0p, D1p), lambda i: (0, 0), **wmode),  # W0^T
                pl.BlockSpec((1, D1p), lambda i: (0, 0), **wmode),    # b0
                pl.BlockSpec((D1p, D2p), lambda i: (0, 0), **wmode),  # W1'
                pl.BlockSpec((1, D2p), lambda i: (0, 0), **wmode),    # b1'
            ],
            out_specs=pl.BlockSpec((tile_b, D2p), lambda i: (i, 0)),
        )
        return pl.pallas_call(
            kernel,
            out_shape=jax.ShapeDtypeStruct((Bp, D2p), jnp.float32),
            grid_spec=grid_spec,
            compiler_params=pltpu.CompilerParams(
                dimension_semantics=("parallel",),
                vmem_limit_bytes=vmem_limit,
            ),
        )(x_p, w0_p, b0_p, w1_p, b1_p)

    try:
        out = _run(single_buffer_weights=True)
    except Exception:
        # Fallback if this JAX build rejects pipeline_mode=pl.Buffered(1) on
        # pallas_call BlockSpecs; semantics are identical, only buffering differs.
        out = _run(single_buffer_weights=False)

    if Bp != B or D2p != D2:
        out = out[:B, :D2]
    return out.astype(x.dtype)


def init_params(key, dimensions):
    """Deterministic parameter init matching the module's init_parameters().

    Weights: xavier_normal_ with gain = calculate_gain('relu') = sqrt(2).
    Biases : nn.Linear default (uniform in +-1/sqrt(fan_in)).
    RegLayer LayerNorm: gamma = 1, beta = 0.
    """
    gain = math.sqrt(2.0)  # calculate_gain('relu')
    params = []
    for i in range(len(dimensions) - 1):
        fan_in, fan_out = dimensions[i], dimensions[i + 1]
        key, kw, kb = jax.random.split(key, 3)
        std = gain * math.sqrt(2.0 / (fan_in + fan_out))
        # PyTorch weight is (out, in); store transposed (in, out) for the kernel.
        w_t = std * jax.random.normal(kw, (fan_in, fan_out), jnp.float32)
        bound = 1.0 / math.sqrt(fan_in)
        b = jax.random.uniform(kb, (1, fan_out), jnp.float32, -bound, bound)
        params.append((w_t, b))
    regs = []
    for i in range(1, len(dimensions) - 1):
        d = dimensions[i]
        regs.append((jnp.ones((1, d), jnp.float32),
                     jnp.zeros((1, d), jnp.float32)))
    return params, regs


def reference_forward(x, params, regs, *, mxu_dtype=jnp.float32):
    """Pure-JAX reference.  mxu_dtype=bfloat16 mimics the kernel's MXU inputs."""
    h = x
    for i, (w_t, b) in enumerate(params):
        if i > 0:
            h = jnp.maximum(h, 0.0)
            g, be = regs[i - 1]
            mean = jnp.mean(h, axis=-1, keepdims=True)
            var = jnp.mean((h - mean) ** 2, axis=-1, keepdims=True)
            h = (h - mean) * jax.lax.rsqrt(var + 1e-5) * g + be
        h = jnp.dot(h.astype(mxu_dtype), w_t.astype(mxu_dtype),
                    preferred_element_type=jnp.float32) + b
    return h


if __name__ == "__main__":
    dimensions = [32, 64, 16]     # len > 1; two linear layers, one RegLayer
    batch = 8

    key = jax.random.PRNGKey(0)
    key, kx = jax.random.split(key)
    x = jax.random.normal(kx, (batch, dimensions[0]), jnp.float32)

    params, regs = init_params(key, dimensions)
    (w0_t, b0), (w1_t, b1) = params
    (gamma, beta), = regs

    out = linears_forward(x, w0_t, b0, gamma, beta, w1_t, b1)
    out = jax.block_until_ready(out)

    assert out.shape == (batch, dimensions[-1])

    # Tight check vs a reference that uses the same bf16 MXU inputs.
    ref_bf16 = reference_forward(x, params, regs, mxu_dtype=jnp.bfloat16)
    assert jnp.allclose(out, ref_bf16, atol=2e-3, rtol=2e-3), \
        "mismatch vs bf16-matmul reference"

    # Looser sanity check vs the pure-f32 reference (bf16 operand rounding).
    ref_f32 = reference_forward(x, params, regs, mxu_dtype=jnp.float32)
    assert jnp.allclose(out, ref_f32, atol=5e-2, rtol=5e-2), \
        "mismatch vs f32 reference"

    print("KERNEL_OK")
</pallas_src>

<mosaic_0001>
module attributes {stable_mosaic.version = 11 : i64} {
  func.func @_linears_kernel(%arg0: i32, %arg1: memref<16x128xbf16, #tpu.memory_space<vmem>>, %arg2: memref<128x128xbf16, #tpu.memory_space<vmem>>, %arg3: memref<1x128xf32, #tpu.memory_space<vmem>>, %arg4: memref<128x128xbf16, #tpu.memory_space<vmem>>, %arg5: memref<1x128xf32, #tpu.memory_space<vmem>>, %arg6: memref<16x128xf32, #tpu.memory_space<vmem>>) attributes {dimension_semantics = [#tpu.dimension_semantics<parallel>], iteration_bounds = array<i64: 1>, scalar_prefetch = 0 : i64, scratch_operands = 0 : i64, tpu.core_type = #tpu.core_type<tc>, window_params = [{transform_indices = @transform_0, window_bounds = array<i64: 16, 128>}, {pipeline_mode = #tpu.pipeline_mode<synchronous>, transform_indices = @transform_1, window_bounds = array<i64: 128, 128>}, {pipeline_mode = #tpu.pipeline_mode<synchronous>, transform_indices = @transform_2, window_bounds = array<i64: 1, 128>}, {pipeline_mode = #tpu.pipeline_mode<synchronous>, transform_indices = @transform_3, window_bounds = array<i64: 128, 128>}, {pipeline_mode = #tpu.pipeline_mode<synchronous>, transform_indices = @transform_4, window_bounds = array<i64: 1, 128>}, {transform_indices = @transform_5, window_bounds = array<i64: 16, 128>}]} {
    %c0 = arith.constant 0 : index
    %c0_0 = arith.constant 0 : index
    %0 = vector.load %arg1[%c0, %c0_0] : memref<16x128xbf16, #tpu.memory_space<vmem>>, vector<16x128xbf16>
    %c0_1 = arith.constant 0 : index
    %c0_2 = arith.constant 0 : index
    %1 = vector.load %arg2[%c0_1, %c0_2] : memref<128x128xbf16, #tpu.memory_space<vmem>>, vector<128x128xbf16>
    %cst = arith.constant dense<0.000000e+00> : vector<16x128xf32>
    %2 = tpu.matmul %0, %1, %cst {dimension_numbers = #tpu.dot_dimension_numbers<[1], [0], [0], [1], [0, 0, 1, 1], [], []>} : vector<16x128xbf16>, vector<128x128xbf16>, vector<16x128xf32> -> vector<16x128xf32>
    %c0_3 = arith.constant 0 : index
    %c0_4 = arith.constant 0 : index
    %3 = vector.load %arg3[%c0_3, %c0_4] : memref<1x128xf32, #tpu.memory_space<vmem>>, vector<1x128xf32>
    %4 = vector.broadcast %3 : vector<1x128xf32> to vector<16x128xf32>
    %5 = arith.addf %2, %4 : vector<16x128xf32>
    %cst_5 = arith.constant 0.000000e+00 : f32
    %6 = vector.broadcast %cst_5 : f32 to vector<16x128xf32>
    %7 = arith.maximumf %5, %6 : vector<16x128xf32>
    %cst_6 = arith.constant dense<0.000000e+00> : vector<16xf32>
    %8 = vector.multi_reduction <add>, %7, %cst_6 [1] : vector<16x128xf32> to vector<16xf32>
    %9 = vector.shape_cast %8 : vector<16xf32> to vector<16x1xf32>
    %cst_7 = arith.constant 1.562500e-02 : f32
    %10 = vector.broadcast %cst_7 : f32 to vector<16x1xf32>
    %11 = arith.mulf %9, %10 : vector<16x1xf32>
    %12 = arith.mulf %7, %7 : vector<16x128xf32>
    %cst_8 = arith.constant dense<0.000000e+00> : vector<16xf32>
    %13 = vector.multi_reduction <add>, %12, %cst_8 [1] : vector<16x128xf32> to vector<16xf32>
    %14 = vector.shape_cast %13 : vector<16xf32> to vector<16x1xf32>
    %cst_9 = arith.constant 1.562500e-02 : f32
    %15 = vector.broadcast %cst_9 : f32 to vector<16x1xf32>
    %16 = arith.mulf %14, %15 : vector<16x1xf32>
    %17 = arith.mulf %11, %11 : vector<16x1xf32>
    %18 = arith.subf %16, %17 : vector<16x1xf32>
    %cst_10 = arith.constant 0.000000e+00 : f32
    %19 = vector.broadcast %cst_10 : f32 to vector<16x1xf32>
    %20 = arith.maximumf %18, %19 : vector<16x1xf32>
    %21 = vector.broadcast %11 : vector<16x1xf32> to vector<16x128xf32>
    %22 = arith.subf %7, %21 : vector<16x128xf32>
    %cst_11 = arith.constant 9.99999974E-6 : f32
    %23 = vector.broadcast %cst_11 : f32 to vector<16x1xf32>
    %24 = arith.addf %20, %23 : vector<16x1xf32>
    %25 = math.rsqrt %24 : vector<16x1xf32>
    %26 = vector.broadcast %25 : vector<16x1xf32> to vector<16x128xf32>
    %27 = arith.mulf %22, %26 : vector<16x128xf32>
    %28 = arith.truncf %27 : vector<16x128xf32> to vector<16x128xbf16>
    %c0_12 = arith.constant 0 : index
    %c0_13 = arith.constant 0 : index
    %29 = vector.load %arg4[%c0_12, %c0_13] : memref<128x128xbf16, #tpu.memory_space<vmem>>, vector<128x128xbf16>
    %cst_14 = arith.constant dense<0.000000e+00> : vector<16x128xf32>
    %30 = tpu.matmul %28, %29, %cst_14 {dimension_numbers = #tpu.dot_dimension_numbers<[1], [0], [0], [1], [0, 0, 1, 1], [], []>} : vector<16x128xbf16>, vector<128x128xbf16>, vector<16x128xf32> -> vector<16x128xf32>
    %c0_15 = arith.constant 0 : index
    %c0_16 = arith.constant 0 : index
    %31 = vector.load %arg5[%c0_15, %c0_16] : memref<1x128xf32, #tpu.memory_space<vmem>>, vector<1x128xf32>
    %32 = vector.broadcast %31 : vector<1x128xf32> to vector<16x128xf32>
    %33 = arith.addf %30, %32 : vector<16x128xf32>
    %c0_17 = arith.constant 0 : index
    %c0_18 = arith.constant 0 : index
    %34 = vector.load %arg6[%c0_17, %c0_18] : memref<16x128xf32, #tpu.memory_space<vmem>>, vector<16x128xf32>
    tpu.vector_store %arg6[%c0_17, %c0_18], %33 {strides = array<i32>} : memref<16x128xf32, #tpu.memory_space<vmem>>, vector<16x128xf32>,
    return
  }
  func.func @transform_0(%arg0: i32) -> (i32, i32) {
    %c0_i32 = arith.constant 0 : i32
    %c0_i32_0 = arith.constant 0 : i32
    return %arg0, %c0_i32 : i32, i32
  }
  func.func @transform_1(%arg0: i32) -> (i32, i32) {
    %c0_i32 = arith.constant 0 : i32
    %c0_i32_0 = arith.constant 0 : i32
    %c0_i32_1 = arith.constant 0 : i32
    return %c0_i32, %c0_i32_0 : i32, i32
  }
  func.func @transform_2(%arg0: i32) -> (i32, i32) {
    %c0_i32 = arith.constant 0 : i32
    %c0_i32_0 = arith.constant 0 : i32
    %c0_i32_1 = arith.constant 0 : i32
    return %c0_i32, %c0_i32_0 : i32, i32
  }
  func.func @transform_3(%arg0: i32) -> (i32, i32) {
    %c0_i32 = arith.constant 0 : i32
    %c0_i32_0 = arith.constant 0 : i32
    %c0_i32_1 = arith.constant 0 : i32
    return %c0_i32, %c0_i32_0 : i32, i32
  }
  func.func @transform_4(%arg0: i32) -> (i32, i32) {
    %c0_i32 = arith.constant 0 : i32
    %c0_i32_0 = arith.constant 0 : i32
    %c0_i32_1 = arith.constant 0 : i32
    return %c0_i32, %c0_i32_0 : i32, i32
  }
  func.func @transform_5(%arg0: i32) -> (i32, i32) {
    %c0_i32 = arith.constant 0 : i32
    %c0_i32_0 = arith.constant 0 : i32
    return %arg0, %c0_i32 : i32, i32
  }
}

module attributes {stable_mosaic.version = 11 : i64} {
  func.func @_linears_kernel(%arg0: i32, %arg1: memref<16x128xbf16, #tpu.memory_space<vmem>>, %arg2: memref<128x128xbf16, #tpu.memory_space<vmem>>, %arg3: memref<1x128xf32, #tpu.memory_space<vmem>>, %arg4: memref<128x128xbf16, #tpu.memory_space<vmem>>, %arg5: memref<1x128xf32, #tpu.memory_space<vmem>>, %arg6: memref<16x128xf32, #tpu.memory_space<vmem>>) attributes {dimension_semantics = [#tpu.dimension_semantics<parallel>], iteration_bounds = array<i64: 1>, scalar_prefetch = 0 : i64, scratch_operands = 0 : i64, tpu.core_type = #tpu.core_type<tc>, window_params = [{transform_indices = @transform_0, window_bounds = array<i64: 16, 128>}, {pipeline_mode = #tpu.pipeline_mode<synchronous>, transform_indices = @transform_1, window_bounds = array<i64: 128, 128>}, {pipeline_mode = #tpu.pipeline_mode<synchronous>, transform_indices = @transform_2, window_bounds = array<i64: 1, 128>}, {pipeline_mode = #tpu.pipeline_mode<synchronous>, transform_indices = @transform_3, window_bounds = array<i64: 128, 128>}, {pipeline_mode = #tpu.pipeline_mode<synchronous>, transform_indices = @transform_4, window_bounds = array<i64: 1, 128>}, {transform_indices = @transform_5, window_bounds = array<i64: 16, 128>}]} {
    %c0 = arith.constant 0 : index
    %c0_0 = arith.constant 0 : index
    %0 = vector.load %arg1[%c0, %c0_0] : memref<16x128xbf16, #tpu.memory_space<vmem>>, vector<16x128xbf16>
    %c0_1 = arith.constant 0 : index
    %c0_2 = arith.constant 0 : index
    %1 = vector.load %arg2[%c0_1, %c0_2] : memref<128x128xbf16, #tpu.memory_space<vmem>>, vector<128x128xbf16>
    %cst = arith.constant dense<0.000000e+00> : vector<16x128xf32>
    %2 = tpu.matmul %0, %1, %cst {dimension_numbers = #tpu.dot_dimension_numbers<[1], [0], [0], [1], [0, 0, 1, 1], [], []>} : vector<16x128xbf16>, vector<128x128xbf16>, vector<16x128xf32> -> vector<16x128xf32>
    %c0_3 = arith.constant 0 : index
    %c0_4 = arith.constant 0 : index
    %3 = vector.load %arg3[%c0_3, %c0_4] : memref<1x128xf32, #tpu.memory_space<vmem>>, vector<1x128xf32>
    %4 = vector.broadcast %3 : vector<1x128xf32> to vector<16x128xf32>
    %5 = arith.addf %2, %4 : vector<16x128xf32>
    %cst_5 = arith.constant 0.000000e+00 : f32
    %6 = vector.broadcast %cst_5 : f32 to vector<16x128xf32>
    %7 = arith.maximumf %5, %6 : vector<16x128xf32>
    %cst_6 = arith.constant dense<0.000000e+00> : vector<16xf32>
    %8 = vector.multi_reduction <add>, %7, %cst_6 [1] : vector<16x128xf32> to vector<16xf32>
    %9 = vector.shape_cast %8 : vector<16xf32> to vector<16x1xf32>
    %cst_7 = arith.constant 1.562500e-02 : f32
    %10 = vector.broadcast %cst_7 : f32 to vector<16x1xf32>
    %11 = arith.mulf %9, %10 : vector<16x1xf32>
    %12 = arith.mulf %7, %7 : vector<16x128xf32>
    %cst_8 = arith.constant dense<0.000000e+00> : vector<16xf32>
    %13 = vector.multi_reduction <add>, %12, %cst_8 [1] : vector<16x128xf32> to vector<16xf32>
    %14 = vector.shape_cast %13 : vector<16xf32> to vector<16x1xf32>
    %cst_9 = arith.constant 1.562500e-02 : f32
    %15 = vector.broadcast %cst_9 : f32 to vector<16x1xf32>
    %16 = arith.mulf %14, %15 : vector<16x1xf32>
    %17 = arith.mulf %11, %11 : vector<16x1xf32>
    %18 = arith.subf %16, %17 : vector<16x1xf32>
    %cst_10 = arith.constant 0.000000e+00 : f32
    %19 = vector.broadcast %cst_10 : f32 to vector<16x1xf32>
    %20 = arith.maximumf %18, %19 : vector<16x1xf32>
    %21 = vector.broadcast %11 : vector<16x1xf32> to vector<16x128xf32>
    %22 = arith.subf %7, %21 : vector<16x128xf32>
    %cst_11 = arith.constant 9.99999974E-6 : f32
    %23 = vector.broadcast %cst_11 : f32 to vector<16x1xf32>
    %24 = arith.addf %20, %23 : vector<16x1xf32>
    %25 = math.rsqrt %24 : vector<16x1xf32>
    %26 = vector.broadcast %25 : vector<16x1xf32> to vector<16x128xf32>
    %27 = arith.mulf %22, %26 : vector<16x128xf32>
    %28 = arith.truncf %27 : vector<16x128xf32> to vector<16x128xbf16>
    %c0_12 = arith.constant 0 : index
    %c0_13 = arith.constant 0 : index
    %29 = vector.load %arg4[%c0_12, %c0_13] : memref<128x128xbf16, #tpu.memory_space<vmem>>, vector<128x128xbf16>
    %cst_14 = arith.constant dense<0.000000e+00> : vector<16x128xf32>
    %30 = tpu.matmul %28, %29, %cst_14 {dimension_numbers = #tpu.dot_dimension_numbers<[1], [0], [0], [1], [0, 0, 1, 1], [], []>} : vector<16x128xbf16>, vector<128x128xbf16>, vector<16x128xf32> -> vector<16x128xf32>
    %c0_15 = arith.constant 0 : index
    %c0_16 = arith.constant 0 : index
    %31 = vector.load %arg5[%c0_15, %c0_16] : memref<1x128xf32, #tpu.memory_space<vmem>>, vector<1x128xf32>
    %32 = vector.broadcast %31 : vector<1x128xf32> to vector<16x128xf32>
    %33 = arith.addf %30, %32 : vector<16x128xf32>
    %c0_17 = arith.constant 0 : index
    %c0_18 = arith.constant 0 : index
    %34 = vector.load %arg6[%c0_17, %c0_18] : memref<16x128xf32, #tpu.memory_space<vmem>>, vector<16x128xf32>
    tpu.vector_store %arg6[%c0_17, %c0_18], %33 {strides = array<i32>} : memref<16x128xf32, #tpu.memory_space<vmem>>, vector<16x128xf32>,
    return
  }
  func.func @transform_0(%arg0: i32) -> (i32, i32) {
    %c0_i32 = arith.constant 0 : i32
    %c0_i32_0 = arith.constant 0 : i32
    return %arg0, %c0_i32 : i32, i32
  }
  func.func @transform_1(%arg0: i32) -> (i32, i32) {
    %c0_i32 = arith.constant 0 : i32
    %c0_i32_0 = arith.constant 0 : i32
    %c0_i32_1 = arith.constant 0 : i32
    return %c0_i32, %c0_i32_0 : i32, i32
  }
  func.func @transform_2(%arg0: i32) -> (i32, i32) {
    %c0_i32 = arith.constant 0 : i32
    %c0_i32_0 = arith.constant 0 : i32
    %c0_i32_1 = arith.constant 0 : i32
    return %c0_i32, %c0_i32_0 : i32, i32
  }
  func.func @transform_3(%arg0: i32) -> (i32, i32) {
    %c0_i32 = arith.constant 0 : i32
    %c0_i32_0 = arith.constant 0 : i32
    %c0_i32_1 = arith.constant 0 : i32
    return %c0_i32, %c0_i32_0 : i32, i32
  }
  func.func @transform_4(%arg0: i32) -> (i32, i32) {
    %c0_i32 = arith.constant 0 : i32
    %c0_i32_0 = arith.constant 0 : i32
    %c0_i32_1 = arith.constant 0 : i32
    return %c0_i32, %c0_i32_0 : i32, i32
  }
  func.func @transform_5(%arg0: i32) -> (i32, i32) {
    %c0_i32 = arith.constant 0 : i32
    %c0_i32_0 = arith.constant 0 : i32
    return %arg0, %c0_i32 : i32, i32
  }
}

</mosaic_0001>

<bundles_post_ra>
// kernel: tpu_custom_call.1
= control target key start
LH: loop header
LB: loop body
LE: loop exit
PB: predicated region body
PF: predicated region fallthrough
CT: control target
= control target key end

     0   :  { %10 = vsyncpa [#allocation3], 0  ;;  %s574_s0 = inlined_call_operand.hbm [shape: bf16[16,128], index: 0, kind: input, shape index: {}]   ;;  %s575_s1 = inlined_call_operand.hbm [shape: bf16[128,128], index: 1, kind: input, shape index: {}]   ;;  %s576_s2 = inlined_call_operand.vmem [shape: f32[1,128], index: 2, kind: input, shape index: {}]   ;;  %s577_s3 = inlined_call_operand.hbm [shape: bf16[128,128], index: 3, kind: input, shape index: {}]   ;;  %s578_s4 = inlined_call_operand.vmem [shape: f32[1,128], index: 4, kind: input, shape index: {}]   ;;  %s579_s5 = inlined_call_operand.hbm [shape: f32[16,128], index: 5, kind: output, shape index: {}]  }
   0x1   :  { %11 = vsyncpa [#allocation6], 0 }
   0x2   :  { %12 = vsyncpa [#allocation4], 0  ;;  %s30_s20 = sshll.u32 %s575_s1, 4  ;;  %s512_s21 = smov [#allocation5]   ;;  %s31_s20 = int_to_ptr.hbm [resolvable:$true] %s30_s20 }
   0x3   :  { %s32_s22 = sshll.u32 %s512_s21, 4  ;;  %s17_s25 = sshll.u32 %s574_s0, 4  ;;  %s33_s22 = int_to_ptr.vmem [resolvable:$true] %s32_s22  ;;  %s18_s25 = int_to_ptr.hbm [resolvable:$true] %s17_s25 }
   0x4   :  { %s513_s26 = smov 64   ;;  %s514_s27 = smov 4  }
   0x5   :  { %38 = dma.hbm_to_vmem [thread:$0]  %s31_s20, 1024, %s33_s22, [#allocation6], %s513_s26, %s513_s26, %s514_s27  }
   0x6   :  { %s515_s28 = smov [#allocation2]   ;;  %s45_s7 = sshll.u32 %s577_s3, 4  ;;  %s46_s7 = int_to_ptr.hbm [resolvable:$true] %s45_s7 }
   0x7   :  { %s19_s29 = sshll.u32 %s515_s28, 4  ;;  %s516_s1 = smov [#allocation7]   ;;  %s20_s29 = int_to_ptr.vmem [resolvable:$true] %s19_s29 }
   0x8   :  { %25 = dma.hbm_to_vmem [thread:$0]  %s18_s25, 128, %s20_s29, [#allocation3], %s513_s26, %s513_s26, %s514_s27  }
   0x9   :  { %s47_s8 = sshll.u32 %s516_s1, 4  ;;  %s48_s8 = int_to_ptr.vmem [resolvable:$true] %s47_s8 }
   0xa   :  { %53 = dma.hbm_to_vmem [thread:$0]  %s46_s7, 1024, %s48_s8, [#allocation6], %s513_s26, %s513_s26, %s514_s27  }
   0xb   :  { %506 = dma.done.wait [#allocation3], 128  }
   0xc   :  { %507 = vsyncadd [#allocation3], 4294967168 }
   0xd   :  { %508 = dma.done.wait [#allocation6], 2048  }
   0xe   :  { %509 = vsyncadd [#allocation6], 4294965248  ;;  %v387_v0 = vld [vmem:[#allocation5 + $0x38] sm:$0xff]  ;;  %v386_v1 = vld [vmem:[#allocation5 + $0x30] sm:$0xff]  ;;  %s517_s10 = smov [#allocation8]   ;;  %s297_s14 = sshll.u32 %s579_s5, 4  ;;  %s298_s14 = int_to_ptr.hbm [resolvable:$true] %s297_s14 }
   0xf   :  { %144 = vmatpush.bf16.msra.mxu0 %v387_v0  ;;  %v385_v2 = vld [vmem:[#allocation5 + $0x28] sm:$0xff]  ;;  %v384_v3 = vld [vmem:[#allocation5 + $0x20] sm:$0xff]  ;;  %v383_v4 = vld [vmem:[#allocation5 + $0x18] sm:$0xff]  ;;  %s295_s11 = sshll.u32 %s517_s10, 4  ;;  %s518_s15 = smov 128   ;;  %s296_s11 = int_to_ptr.vmem [resolvable:$true] %s295_s11 }
  0x10   :  { %v382_v5 = vld [vmem:[#allocation5 + $0x10] sm:$0xff]  ;;  %v381_v6 = vld [vmem:[#allocation5 + $0x8] sm:$0xff]  ;;  %v380_v7 = vld [vmem:[#allocation5] sm:$0xff]  ;;  %s519_s16 = smov 8  }
  0x11   :  { %v379_v8 = vld [vmem:[#allocation2] sm:$0xff]  ;;  %v394_v19 = vld [vmem:[#allocation7 + $0x30] sm:$0xff]  ;;  %v393_v20 = vld [vmem:[#allocation7 + $0x28] sm:$0xff] }
  0x12   :  { %v404_v9 = vld [vmem:[%s576_s2] ss:$0 sm:$0xff]  ;;  %v392_v21 = vld [vmem:[#allocation7 + $0x20] sm:$0xff]  ;;  %v390_v23 = vld [vmem:[#allocation7 + $0x10] sm:$0xff] }
  0x13   :  { %145 = vmatpush.bf16.msra.mxu0 %v386_v1  ;;  %v395_v18 = vld [vmem:[#allocation7 + $0x38] sm:$0xff]  ;;  %v389_v25 = vld [vmem:[#allocation7 + $0x8] sm:$0xff]  ;;  %v388_v28 = vld [vmem:[#allocation7] sm:$0xff] }
  0x14   :  { %275 = vmatpush.bf16.msra.mxu1 %v395_v18  ;;  %v391_v22 = vld [vmem:[#allocation7 + $0x18] sm:$0xff] }
  0x15   :  { %v405_v61 = vld [vmem:[%s578_s4] ss:$0 sm:$0xff] }
  0x17   :  { %146 = vmatpush.bf16.msra.mxu0 %v385_v2 }
  0x18   :  { %276 = vmatpush.bf16.msra.mxu1 %v394_v19 }
  0x1b   :  { %147 = vmatpush.bf16.msra.mxu0 %v384_v3 }
  0x1c   :  { %277 = vmatpush.bf16.msra.mxu1 %v393_v20 }
  0x1f   :  { %148 = vmatpush.bf16.msra.mxu0 %v383_v4 }
  0x20   :  { %278 = vmatpush.bf16.msra.mxu1 %v392_v21 }
  0x23   :  { %149 = vmatpush.bf16.msra.mxu0 %v382_v5 }
  0x24   :  { %279 = vmatpush.bf16.msra.mxu1 %v391_v22 }
  0x27   :  { %150 = vmatpush.bf16.msra.mxu0 %v381_v6 }
  0x28   :  { %280 = vmatpush.bf16.msra.mxu1 %v390_v23 }
  0x2b   :  { %151 = vmatpush.bf16.msra.mxu0 %v380_v7 }
  0x2c   :  { %281 = vmatpush.bf16.msra.mxu1 %v389_v25 }
  0x2e   :  { %152 = vmatmul.bf16.vlgmr.msra.gmra.mxu0 %v379_v8 }
  0x30   :  { %282 = vmatpush.bf16.msra.mxu1 %v388_v28 }
  0xab   :  { %v153_v10 = vpop.f32.mrf.mxu0 }
  0xac   :  { %v154_v11 = vadd.f32 %v404_v9, %v153_v10 }
  0xae   :  { %v562_v12 = vmax.f32 %v154_v11, 0.0 }
  0xb0   :  { %160 = vadd.xlane.f32.xlu0 %v562_v12  ;;  %v166_v13 = vmul.f32 %v562_v12, %v562_v12 }
  0xb2   :  { %168 = vadd.xlane.f32.xlu1 %v166_v13 }
  0xb3   :  { %v155_v14 = vpop.f32.mrf.mxu0 }
  0xb4   :  { %v156_v15 = vadd.f32 %v404_v9, %v155_v14 }
  0xb6   :  { %v159_v16 = vmax.f32 %v156_v15, 0.0 }
  0xb8   :  { %162 = vadd.xlane.f32.xlu0 %v159_v16  ;;  %v167_v17 = vmul.f32 %v159_v16, %v159_v16 }
  0xba   :  { %170 = vadd.xlane.f32.xlu1 %v167_v17 }
 0x123   :  { %v161_v24 = vpop.xlane.xlu0 %160 }
 0x124   :  { %v164_v26 = vmul.f32 0.015625, %v161_v24 }
 0x125   :  { %v169_v27 = vpop.xlane.xlu1 %168 }
 0x126   :  { %v174_v29 = vmul.f32 %v164_v26, %v164_v26  ;;  %v172_v30 = vmul.f32 0.015625, %v169_v27  ;;  %v180_v55 = vsub.f32 %v562_v12, %v164_v26 }
 0x128   :  { %v176_v31 = vsub.f32 %v172_v30, %v174_v29 }
 0x12a   :  { %v178_v32 = vmax.f32 %v176_v31, 0.0 }
 0x12b   :  { %v163_v33 = vpop.xlane.xlu0 %162 }
 0x12c   :  { %v182_v34 = vadd.f32 1e-05, %v178_v32  ;;  %v165_v35 = vmul.f32 0.015625, %v163_v33 }
 0x12d   :  { %v171_v36 = vpop.xlane.xlu1 %170 }
 0x12e   :  { %406 = vrsqrt.f32 %v182_v34  ;;  %v175_v37 = vmul.f32 %v165_v35, %v165_v35  ;;  %v173_v38 = vmul.f32 0.015625, %v171_v36  ;;  %vm190_vm1 = vweird.f32 %v182_v34 }
 0x12f   :  { %v181_v56 = vsub.f32 %v159_v16, %v165_v35 }
 0x130   :  { %v177_v39 = vsub.f32 %v173_v38, %v175_v37 }
 0x132   :  { %v179_v40 = vmax.f32 %v177_v39, 0.0 }
 0x134   :  { %v407_v41 = vpop.eup %406  ;;  %v183_v42 = vadd.f32 1e-05, %v179_v40 }
 0x135   :  { %v185_v43 = vmul.f32 %v407_v41, %v182_v34  ;;  %vm191_vm0 = vweird.f32 %v407_v41 }
 0x136   :  { %408 = vrsqrt.f32 %v183_v42  ;;  %vm192_vm3 = vmor %vm190_vm1, %vm191_vm0  ;;  %vm200_vm4 = vweird.f32 %v183_v42 }
 0x137   :  { %v186_v44 = vmul.f32 %v407_v41, %v185_v43 }
 0x139   :  { %v187_v45 = vmul.f32 0.5, %v186_v44 }
 0x13b   :  { %v188_v48 = vsub.f32 1.5, %v187_v45 }
 0x13c   :  { %v409_v46 = vpop.eup %408 }
 0x13d   :  { %v195_v47 = vmul.f32 %v409_v46, %v183_v42  ;;  %v189_v51 = vmul.f32 %v407_v41, %v188_v48  ;;  %vm201_vm2 = vweird.f32 %v409_v46 }
 0x13e   :  { %vm202_vm5 = vmor %vm200_vm4, %vm201_vm2 }
 0x13f   :  { %v196_v49 = vmul.f32 %v409_v46, %v195_v47  ;;  %v193_v53 = vsel %vm192_vm3, %v407_v41, %v189_v51 }
 0x140   :  { %v204_v58 = vmul.f32 %v193_v53, %v180_v55 }
 0x141   :  { %v197_v50 = vmul.f32 0.5, %v196_v49 }
 0x143   :  { %v198_v52 = vsub.f32 1.5, %v197_v50 }
 0x145   :  { %v199_v54 = vmul.f32 %v409_v46, %v198_v52 }
 0x147   :  { %v203_v57 = vsel %vm202_vm5, %v409_v46, %v199_v54 }
 0x148   :  { %v205_v59 = vmul.f32 %v203_v57, %v181_v56 }
 0x14a   :  { %v206_v60 = vpack.c.bf16 %v205_v59, %v204_v58 }
 0x14c   :  { %283 = vmatmul.bf16.vlgmr.msra.gmra.mxu1 %v206_v60 }
 0x1c9   :  { %v284_v62 = vpop.f32.mrf.mxu1 }
 0x1ca   :  { %v285_v63 = vadd.f32 %v405_v61, %v284_v62 }
 0x1cc   :  { %289 = vst [vmem:[#allocation8] sm:$0xff] %v285_v63 }
 0x1d1   :  { %v286_v0 = vpop.f32.mrf.mxu1 }
 0x1d2   :  { %v287_v1 = vadd.f32 %v405_v61, %v286_v0 }
 0x1d4   :  { %290 = vst [vmem:[#allocation8 + $0x8] sm:$0xff] %v287_v1 }
 0x1d5   :  { %303 = dma.vmem_to_hbm [thread:$0]  %s296_s11, 256, %s298_s14, [#allocation4], %s518_s15, %s518_s15, %s519_s16  }
 0x1d6   :  { %510 = dma.done.wait [#allocation4], 256  }
 0x1d7   :  { %511 = vsyncadd [#allocation4], 4294967040 }
 0x1d8   :  { %308 = vsyncpa [#allocation3], 1 }
 0x1d9   :  { %309 = vsyncpa [#allocation6], 1 }
 0x1da   :  { %310 = vsyncpa [#allocation4], 1 }

// kernel: tpu_custom_call.1
= control target key start
LH: loop header
LB: loop body
LE: loop exit
PB: predicated region body
PF: predicated region fallthrough
CT: control target
= control target key end

     0   :  { %10 = vsyncpa [#allocation3], 0  ;;  %s574_s0 = inlined_call_operand.hbm [shape: bf16[16,128], index: 0, kind: input, shape index: {}]   ;;  %s575_s1 = inlined_call_operand.hbm [shape: bf16[128,128], index: 1, kind: input, shape index: {}]   ;;  %s576_s2 = inlined_call_operand.vmem [shape: f32[1,128], index: 2, kind: input, shape index: {}]   ;;  %s577_s3 = inlined_call_operand.hbm [shape: bf16[128,128], index: 3, kind: input, shape index: {}]   ;;  %s578_s4 = inlined_call_operand.vmem [shape: f32[1,128], index: 4, kind: input, shape index: {}]   ;;  %s579_s5 = inlined_call_operand.hbm [shape: f32[16,128], index: 5, kind: output, shape index: {}]  }
   0x1   :  { %11 = vsyncpa [#allocation6], 0 }
   0x2   :  { %12 = vsyncpa [#allocation4], 0  ;;  %s30_s20 = sshll.u32 %s575_s1, 4  ;;  %s512_s21 = smov [#allocation5]   ;;  %s31_s20 = int_to_ptr.hbm [resolvable:$true] %s30_s20 }
   0x3   :  { %s32_s22 = sshll.u32 %s512_s21, 4  ;;  %s17_s25 = sshll.u32 %s574_s0, 4  ;;  %s33_s22 = int_to_ptr.vmem [resolvable:$true] %s32_s22  ;;  %s18_s25 = int_to_ptr.hbm [resolvable:$true] %s17_s25 }
   0x4   :  { %s513_s26 = smov 64   ;;  %s514_s27 = smov 4  }
   0x5   :  { %38 = dma.hbm_to_vmem [thread:$0]  %s31_s20, 1024, %s33_s22, [#allocation6], %s513_s26, %s513_s26, %s514_s27  }
   0x6   :  { %s515_s28 = smov [#allocation2]   ;;  %s45_s7 = sshll.u32 %s577_s3, 4  ;;  %s46_s7 = int_to_ptr.hbm [resolvable:$true] %s45_s7 }
   0x7   :  { %s19_s29 = sshll.u32 %s515_s28, 4  ;;  %s516_s1 = smov [#allocation7]   ;;  %s20_s29 = int_to_ptr.vmem [resolvable:$true] %s19_s29 }
   0x8   :  { %25 = dma.hbm_to_vmem [thread:$0]  %s18_s25, 128, %s20_s29, [#allocation3], %s513_s26, %s513_s26, %s514_s27  }
   0x9   :  { %s47_s8 = sshll.u32 %s516_s1, 4  ;;  %s48_s8 = int_to_ptr.vmem [resolvable:$true] %s47_s8 }
   0xa   :  { %53 = dma.hbm_to_vmem [thread:$0]  %s46_s7, 1024, %s48_s8, [#allocation6], %s513_s26, %s513_s26, %s514_s27  }
   0xb   :  { %506 = dma.done.wait [#allocation3], 128  }
   0xc   :  { %507 = vsyncadd [#allocation3], 4294967168 }
   0xd   :  { %508 = dma.done.wait [#allocation6], 2048  }
   0xe   :  { %509 = vsyncadd [#allocation6], 4294965248  ;;  %v387_v0 = vld [vmem:[#allocation5 + $0x38] sm:$0xff]  ;;  %v386_v1 = vld [vmem:[#allocation5 + $0x30] sm:$0xff]  ;;  %s517_s10 = smov [#allocation8]   ;;  %s297_s14 = sshll.u32 %s579_s5, 4  ;;  %s298_s14 = int_to_ptr.hbm [resolvable:$true] %s297_s14 }
   0xf   :  { %144 = vmatpush.bf16.msra.mxu0 %v387_v0  ;;  %v385_v2 = vld [vmem:[#allocation5 + $0x28] sm:$0xff]  ;;  %v384_v3 = vld [vmem:[#allocation5 + $0x20] sm:$0xff]  ;;  %v383_v4 = vld [vmem:[#allocation5 + $0x18] sm:$0xff]  ;;  %s295_s11 = sshll.u32 %s517_s10, 4  ;;  %s518_s15 = smov 128   ;;  %s296_s11 = int_to_ptr.vmem [resolvable:$true] %s295_s11 }
  0x10   :  { %v382_v5 = vld [vmem:[#allocation5 + $0x10] sm:$0xff]  ;;  %v381_v6 = vld [vmem:[#allocation5 + $0x8] sm:$0xff]  ;;  %v380_v7 = vld [vmem:[#allocation5] sm:$0xff]  ;;  %s519_s16 = smov 8  }
  0x11   :  { %v379_v8 = vld [vmem:[#allocation2] sm:$0xff]  ;;  %v394_v19 = vld [vmem:[#allocation7 + $0x30] sm:$0xff]  ;;  %v393_v20 = vld [vmem:[#allocation7 + $0x28] sm:$0xff] }
  0x12   :  { %v404_v9 = vld [vmem:[%s576_s2] ss:$0 sm:$0xff]  ;;  %v392_v21 = vld [vmem:[#allocation7 + $0x20] sm:$0xff]  ;;  %v390_v23 = vld [vmem:[#allocation7 + $0x10] sm:$0xff] }
  0x13   :  { %145 = vmatpush.bf16.msra.mxu0 %v386_v1  ;;  %v395_v18 = vld [vmem:[#allocation7 + $0x38] sm:$0xff]  ;;  %v389_v25 = vld [vmem:[#allocation7 + $0x8] sm:$0xff]  ;;  %v388_v28 = vld [vmem:[#allocation7] sm:$0xff] }
  0x14   :  { %275 = vmatpush.bf16.msra.mxu1 %v395_v18  ;;  %v391_v22 = vld [vmem:[#allocation7 + $0x18] sm:$0xff] }
  0x15   :  { %v405_v61 = vld [vmem:[%s578_s4] ss:$0 sm:$0xff] }
  0x17   :  { %146 = vmatpush.bf16.msra.mxu0 %v385_v2 }
  0x18   :  { %276 = vmatpush.bf16.msra.mxu1 %v394_v19 }
  0x1b   :  { %147 = vmatpush.bf16.msra.mxu0 %v384_v3 }
  0x1c   :  { %277 = vmatpush.bf16.msra.mxu1 %v393_v20 }
  0x1f   :  { %148 = vmatpush.bf16.msra.mxu0 %v383_v4 }
  0x20   :  { %278 = vmatpush.bf16.msra.mxu1 %v392_v21 }
  0x23   :  { %149 = vmatpush.bf16.msra.mxu0 %v382_v5 }
  0x24   :  { %279 = vmatpush.bf16.msra.mxu1 %v391_v22 }
  0x27   :  { %150 = vmatpush.bf16.msra.mxu0 %v381_v6 }
  0x28   :  { %280 = vmatpush.bf16.msra.mxu1 %v390_v23 }
  0x2b   :  { %151 = vmatpush.bf16.msra.mxu0 %v380_v7 }
  0x2c   :  { %281 = vmatpush.bf16.msra.mxu1 %v389_v25 }
  0x2e   :  { %152 = vmatmul.bf16.vlgmr.msra.gmra.mxu0 %v379_v8 }
  0x30   :  { %282 = vmatpush.bf16.msra.mxu1 %v388_v28 }
  0xab   :  { %v153_v10 = vpop.f32.mrf.mxu0 }
  0xac   :  { %v154_v11 = vadd.f32 %v404_v9, %v153_v10 }
  0xae   :  { %v562_v12 = vmax.f32 %v154_v11, 0.0 }
  0xb0   :  { %160 = vadd.xlane.f32.xlu0 %v562_v12  ;;  %v166_v13 = vmul.f32 %v562_v12, %v562_v12 }
  0xb2   :  { %168 = vadd.xlane.f32.xlu1 %v166_v13 }
  0xb3   :  { %v155_v14 = vpop.f32.mrf.mxu0 }
  0xb4   :  { %v156_v15 = vadd.f32 %v404_v9, %v155_v14 }
  0xb6   :  { %v159_v16 = vmax.f32 %v156_v15, 0.0 }
  0xb8   :  { %162 = vadd.xlane.f32.xlu0 %v159_v16  ;;  %v167_v17 = vmul.f32 %v159_v16, %v159_v16 }
  0xba   :  { %170 = vadd.xlane.f32.xlu1 %v167_v17 }
 0x123   :  { %v161_v24 = vpop.xlane.xlu0 %160 }
 0x124   :  { %v164_v26 = vmul.f32 0.015625, %v161_v24 }
 0x125   :  { %v169_v27 = vpop.xlane.xlu1 %168 }
 0x126   :  { %v174_v29 = vmul.f32 %v164_v26, %v164_v26  ;;  %v172_v30 = vmul.f32 0.015625, %v169_v27  ;;  %v180_v55 = vsub.f32 %v562_v12, %v164_v26 }
 0x128   :  { %v176_v31 = vsub.f32 %v172_v30, %v174_v29 }
 0x12a   :  { %v178_v32 = vmax.f32 %v176_v31, 0.0 }
 0x12b   :  { %v163_v33 = vpop.xlane.xlu0 %162 }
 0x12c   :  { %v182_v34 = vadd.f32 1e-05, %v178_v32  ;;  %v165_v35 = vmul.f32 0.015625, %v163_v33 }
 0x12d   :  { %v171_v36 = vpop.xlane.xlu1 %170 }
 0x12e   :  { %406 = vrsqrt.f32 %v182_v34  ;;  %v175_v37 = vmul.f32 %v165_v35, %v165_v35  ;;  %v173_v38 = vmul.f32 0.015625, %v171_v36  ;;  %vm190_vm1 = vweird.f32 %v182_v34 }
 0x12f   :  { %v181_v56 = vsub.f32 %v159_v16, %v165_v35 }
 0x130   :  { %v177_v39 = vsub.f32 %v173_v38, %v175_v37 }
 0x132   :  { %v179_v40 = vmax.f32 %v177_v39, 0.0 }
 0x134   :  { %v407_v41 = vpop.eup %406  ;;  %v183_v42 = vadd.f32 1e-05, %v179_v40 }
 0x135   :  { %v185_v43 = vmul.f32 %v407_v41, %v182_v34  ;;  %vm191_vm0 = vweird.f32 %v407_v41 }
 0x136   :  { %408 = vrsqrt.f32 %v183_v42  ;;  %vm192_vm3 = vmor %vm190_vm1, %vm191_vm0  ;;  %vm200_vm4 = vweird.f32 %v183_v42 }
 0x137   :  { %v186_v44 = vmul.f32 %v407_v41, %v185_v43 }
 0x139   :  { %v187_v45 = vmul.f32 0.5, %v186_v44 }
 0x13b   :  { %v188_v48 = vsub.f32 1.5, %v187_v45 }
 0x13c   :  { %v409_v46 = vpop.eup %408 }
 0x13d   :  { %v195_v47 = vmul.f32 %v409_v46, %v183_v42  ;;  %v189_v51 = vmul.f32 %v407_v41, %v188_v48  ;;  %vm201_vm2 = vweird.f32 %v409_v46 }
 0x13e   :  { %vm202_vm5 = vmor %vm200_vm4, %vm201_vm2 }
 0x13f   :  { %v196_v49 = vmul.f32 %v409_v46, %v195_v47  ;;  %v193_v53 = vsel %vm192_vm3, %v407_v41, %v189_v51 }
 0x140   :  { %v204_v58 = vmul.f32 %v193_v53, %v180_v55 }
 0x141   :  { %v197_v50 = vmul.f32 0.5, %v196_v49 }
 0x143   :  { %v198_v52 = vsub.f32 1.5, %v197_v50 }
 0x145   :  { %v199_v54 = vmul.f32 %v409_v46, %v198_v52 }
 0x147   :  { %v203_v57 = vsel %vm202_vm5, %v409_v46, %v199_v54 }
 0x148   :  { %v205_v59 = vmul.f32 %v203_v57, %v181_v56 }
 0x14a   :  { %v206_v60 = vpack.c.bf16 %v205_v59, %v204_v58 }
 0x14c   :  { %283 = vmatmul.bf16.vlgmr.msra.gmra.mxu1 %v206_v60 }
 0x1c9   :  { %v284_v62 = vpop.f32.mrf.mxu1 }
 0x1ca   :  { %v285_v63 = vadd.f32 %v405_v61, %v284_v62 }
 0x1cc   :  { %289 = vst [vmem:[#allocation8] sm:$0xff] %v285_v63 }
 0x1d1   :  { %v286_v0 = vpop.f32.mrf.mxu1 }
 0x1d2   :  { %v287_v1 = vadd.f32 %v405_v61, %v286_v0 }
 0x1d4   :  { %290 = vst [vmem:[#allocation8 + $0x8] sm:$0xff] %v287_v1 }
 0x1d5   :  { %303 = dma.vmem_to_hbm [thread:$0]  %s296_s11, 256, %s298_s14, [#allocation4], %s518_s15, %s518_s15, %s519_s16  }
 0x1d6   :  { %510 = dma.done.wait [#allocation4], 256  }
 0x1d7   :  { %511 = vsyncadd [#allocation4], 4294967040 }
 0x1d8   :  { %308 = vsyncpa [#allocation3], 1 }
 0x1d9   :  { %309 = vsyncpa [#allocation6], 1 }
 0x1da   :  { %310 = vsyncpa [#allocation4], 1 }

</bundles_post_ra>
